<compile_context>
chip_gen: v5e
topology: v5e:2x2
jax: 0.10.0
libtpu: 0.0.40
codegen_flags: <defaults>
</compile_context>

<pallas_src>
import functools

import jax
import jax.numpy as jnp
from jax import lax
from jax.experimental import pallas as pl
from jax.experimental.pallas import tpu as pltpu

MAXPAD = 4  # max of (k-1) for k in {3, 4, 5}


def _round_up(x, m):
    return ((x + m - 1) // m) * m


def _kim_cnn_kernel(x_ref, w_ref, b_ref, o_ref, xpad_ref, *,
                    batch_block, seq_len, l_seg, out_channel, c_pad):
    """One block of `batch_block` sequences per grid step.

    x_ref   : (B*L, D)  f32   unpadded input rows, batch-major
    w_ref   : (5*D, C)  bf16  fused conv weights (tap-major rows)
    b_ref   : (1, C)    f32   fused conv bias
    o_ref   : (B, C)    f32   pooled features (first 3*OC columns are real)
    xpad_ref: (2*MAXPAD + B*l_seg, D) bf16 scratch: zero header, then per batch
              element L data rows followed by 2*MAXPAD zero rows.
    """
    B, L, L_seg, OC, C = batch_block, seq_len, l_seg, out_channel, c_pad
    M = B * L_seg
    d = x_ref.shape[1]

    # --- build the zero-padded, batch-contiguous layout in VMEM (bf16). ---
    # Re-zero every step (scratch persists per-core; keeps megacore safe).
    xpad_ref[...] = jnp.zeros(xpad_ref.shape, xpad_ref.dtype)
    for b in range(B):
        base = 2 * MAXPAD + b * L_seg
        xpad_ref[base:base + L, :] = (
            x_ref[b * L:(b + 1) * L, :].astype(xpad_ref.dtype))

    # --- fused conv: 5 shifted (M, D) @ (D, C) matmuls, f32 accumulation. ---
    # acc row r = b*L_seg + u holds fused conv output position u of element b.
    acc = None
    for dh in range(5):
        xs = xpad_ref[MAXPAD + dh:MAXPAD + dh + M, :]          # (M, D) bf16
        wk = w_ref[dh * d:(dh + 1) * d, :]                      # (D, C) bf16
        p = jnp.dot(xs, wk, preferred_element_type=jnp.float32)
        acc = p if acc is None else acc + p

    # --- pool-range mask (fused-conv position u): k=3 valid u>=2, k=4 u>=1,
    #     k=5 u>=0; all convs valid for u < L + 4.  (Hoisted out of the loop.)
    t_idx = lax.broadcasted_iota(jnp.int32, (L_seg, C), 0)
    c_idx = lax.broadcasted_iota(jnp.int32, (L_seg, C), 1)
    thr = jnp.where(c_idx < OC, 2, jnp.where(c_idx < 2 * OC, 1, 0))
    valid = (t_idx >= thr) & (t_idx < L + 4)
    neg = jnp.float32(-jnp.inf)

    # --- max-pool over time, then bias + ReLU (commute with the max). ---
    bias = b_ref[...]                                           # (1, C) f32
    for b in range(B):
        seg = acc[b * L_seg:(b + 1) * L_seg, :]                 # (L_seg, C)
        pooled = jnp.max(jnp.where(valid, seg, neg), axis=0, keepdims=True)
        o_ref[b:b + 1, :] = jnp.maximum(pooled + bias, 0.0).astype(o_ref.dtype)


def kim_cnn_encoder(x_nchw, weights, biases, *, block_batch=8):
    """x_nchw: (N, 1, L, D) f32.  weights[i]: (OC, 1, k_i, D), biases[i]: (OC,)."""
    n, c, seq_len, embed_dim = x_nchw.shape
    assert c == 1
    OC = weights[0].shape[0]
    C = _round_up(3 * OC, 128)          # lane-dense output width
    L_seg = seq_len + 2 * MAXPAD

    # Batch block: keep the x block sublane-aligned (8 | B*L).
    B = max(1, min(block_batch, n))
    while (B * seq_len) % 8 != 0:
        B += 1
    n_pad = _round_up(n, B)

    # Input as a 2-D batch-major slab (free reshape, no HBM padding copy).
    x2d = x_nchw[:, 0].reshape(n * seq_len, embed_dim)
    if n_pad != n:
        x2d = jnp.pad(x2d, ((0, (n_pad - n) * seq_len), (0, 0)))

    # Fused weights: (5, D, C) tap-major, zero-padded taps & output columns.
    wf = jnp.zeros((5, embed_dim, C), jnp.float32)
    bf = jnp.zeros((1, C), jnp.float32)
    for gi, (w, b) in enumerate(zip(weights, biases)):
        k = w.shape[2]
        w_kdo = jnp.transpose(w[:, 0], (1, 2, 0))               # (k, D, OC)
        wf = wf.at[:k, :, gi * OC:(gi + 1) * OC].set(w_kdo)
        bf = bf.at[0, gi * OC:(gi + 1) * OC].set(b)
    wf2d = wf.reshape(5 * embed_dim, C).astype(jnp.bfloat16)

    kernel = functools.partial(
        _kim_cnn_kernel, batch_block=B, seq_len=seq_len, l_seg=L_seg,
        out_channel=OC, c_pad=C)

    out = pl.pallas_call(
        kernel,
        out_shape=jax.ShapeDtypeStruct((n_pad, C), jnp.float32),
        grid_spec=pltpu.PrefetchScalarGridSpec(
            num_scalar_prefetch=0,
            grid=(n_pad // B,),
            in_specs=[
                pl.BlockSpec((B * seq_len, embed_dim), lambda i: (i, 0)),
                pl.BlockSpec((5 * embed_dim, C), lambda i: (0, 0)),
                pl.BlockSpec((1, C), lambda i: (0, 0)),
            ],
            out_specs=pl.BlockSpec((B, C), lambda i: (i, 0)),
            scratch_shapes=[
                pltpu.VMEM((2 * MAXPAD + B * L_seg, embed_dim), jnp.bfloat16)],
        ),
        compiler_params=pltpu.CompilerParams(
            dimension_semantics=("parallel",)),
    )(x2d, wf2d, bf)

    return out[:n, :3 * OC]             # dropout == identity (inference)


def ref_forward(x_nchw, weights, biases):
    """Pure-JAX reference matching the PyTorch forward (eval mode)."""
    outs = []
    for w, b in zip(weights, biases):
        k = w.shape[2]
        y = lax.conv_general_dilated(
            x_nchw, w, window_strides=(1, 1),
            padding=((k - 1, k - 1), (0, 0)),
            dimension_numbers=('NCHW', 'OIHW', 'NCHW'))        # (N, OC, T, 1)
        y = jnp.maximum(y[..., 0] + b[None, :, None], 0.0)      # (N, OC, T)
        outs.append(jnp.max(y, axis=2))                         # (N, OC)
    return jnp.concatenate(outs, axis=1)


if __name__ == "__main__":
    # Small config: batch=16, seq_len=8, embed_dim=32, output_channel=16.
    N, L, D, OC = 16, 8, 32, 16

    key = jax.random.PRNGKey(0)
    kx, kw1, kw2, kw3, kb1, kb2, kb3 = jax.random.split(key, 7)

    x = jax.random.normal(kx, (N, 1, L, D), jnp.float32)
    weights = [
        0.1 * jax.random.normal(kw1, (OC, 1, 3, D), jnp.float32),
        0.1 * jax.random.normal(kw2, (OC, 1, 4, D), jnp.float32),
        0.1 * jax.random.normal(kw3, (OC, 1, 5, D), jnp.float32),
    ]
    biases = [
        0.1 * jax.random.normal(kb1, (OC,), jnp.float32),
        0.1 * jax.random.normal(kb2, (OC,), jnp.float32),
        0.1 * jax.random.normal(kb3, (OC,), jnp.float32),
    ]

    out = jax.block_until_ready(kim_cnn_encoder(x, weights, biases))

    # Reference on bf16-rounded inputs: the kernel computes the matmuls in bf16
    # with f32 accumulation, so this is the apples-to-apples comparison.
    to_bf16 = lambda a: a.astype(jnp.bfloat16).astype(jnp.float32)
    ref = jax.block_until_ready(
        ref_forward(to_bf16(x), [to_bf16(w) for w in weights], biases))

    assert out.shape == (N, 3 * OC), out.shape
    max_err = float(jnp.max(jnp.abs(out - ref)))
    assert jnp.allclose(out, ref, atol=2e-3, rtol=2e-3), max_err
    print("KERNEL_OK")
</pallas_src>

<mosaic_0001>
module attributes {stable_mosaic.version = 11 : i64} {
  func.func @_kim_cnn_kernel(%arg0: i32, %arg1: memref<64x32xf32, #tpu.memory_space<vmem>>, %arg2: memref<160x128xbf16, #tpu.memory_space<vmem>>, %arg3: memref<1x128xf32, #tpu.memory_space<vmem>>, %arg4: memref<8x128xf32, #tpu.memory_space<vmem>>, %arg5: memref<136x32xbf16, #tpu.memory_space<vmem>>) attributes {dimension_semantics = [#tpu.dimension_semantics<parallel>], iteration_bounds = array<i64: 2>, scalar_prefetch = 0 : i64, scratch_operands = 1 : i64, tpu.core_type = #tpu.core_type<tc>, window_params = [{transform_indices = @transform_0, window_bounds = array<i64: 64, 32>}, {pipeline_mode = #tpu.pipeline_mode<synchronous>, transform_indices = @transform_1, window_bounds = array<i64: 160, 128>}, {pipeline_mode = #tpu.pipeline_mode<synchronous>, transform_indices = @transform_2, window_bounds = array<i64: 1, 128>}, {transform_indices = @transform_3, window_bounds = array<i64: 8, 128>}]} {
    %cst = arith.constant 0.000000e+00 : bf16
    %0 = vector.broadcast %cst : bf16 to vector<136x32xbf16>
    %c0 = arith.constant 0 : index
    %c0_0 = arith.constant 0 : index
    %1 = vector.load %arg5[%c0, %c0_0] : memref<136x32xbf16, #tpu.memory_space<vmem>>, vector<136x32xbf16>
    tpu.vector_store %arg5[%c0, %c0_0], %0 {strides = array<i32>} : memref<136x32xbf16, #tpu.memory_space<vmem>>, vector<136x32xbf16>,
    %c0_1 = arith.constant 0 : index
    %c0_2 = arith.constant 0 : index
    %2 = vector.load %arg1[%c0_1, %c0_2] : memref<64x32xf32, #tpu.memory_space<vmem>>, vector<8x32xf32>
    %3 = arith.truncf %2 : vector<8x32xf32> to vector<8x32xbf16>
    %c8 = arith.constant 8 : index
    %c0_3 = arith.constant 0 : index
    %4 = vector.load %arg5[%c8, %c0_3] : memref<136x32xbf16, #tpu.memory_space<vmem>>, vector<8x32xbf16>
    tpu.vector_store %arg5[%c8, %c0_3], %3 {strides = array<i32>} : memref<136x32xbf16, #tpu.memory_space<vmem>>, vector<8x32xbf16>,
    %c8_4 = arith.constant 8 : index
    %c0_5 = arith.constant 0 : index
    %5 = vector.load %arg1[%c8_4, %c0_5] : memref<64x32xf32, #tpu.memory_space<vmem>>, vector<8x32xf32>
    %6 = arith.truncf %5 : vector<8x32xf32> to vector<8x32xbf16>
    %c24 = arith.constant 24 : index
    %c0_6 = arith.constant 0 : index
    %7 = vector.load %arg5[%c24, %c0_6] : memref<136x32xbf16, #tpu.memory_space<vmem>>, vector<8x32xbf16>
    tpu.vector_store %arg5[%c24, %c0_6], %6 {strides = array<i32>} : memref<136x32xbf16, #tpu.memory_space<vmem>>, vector<8x32xbf16>,
    %c16 = arith.constant 16 : index
    %c0_7 = arith.constant 0 : index
    %8 = vector.load %arg1[%c16, %c0_7] : memref<64x32xf32, #tpu.memory_space<vmem>>, vector<8x32xf32>
    %9 = arith.truncf %8 : vector<8x32xf32> to vector<8x32xbf16>
    %c40 = arith.constant 40 : index
    %c0_8 = arith.constant 0 : index
    %10 = vector.load %arg5[%c40, %c0_8] : memref<136x32xbf16, #tpu.memory_space<vmem>>, vector<8x32xbf16>
    tpu.vector_store %arg5[%c40, %c0_8], %9 {strides = array<i32>} : memref<136x32xbf16, #tpu.memory_space<vmem>>, vector<8x32xbf16>,
    %c24_9 = arith.constant 24 : index
    %c0_10 = arith.constant 0 : index
    %11 = vector.load %arg1[%c24_9, %c0_10] : memref<64x32xf32, #tpu.memory_space<vmem>>, vector<8x32xf32>
    %12 = arith.truncf %11 : vector<8x32xf32> to vector<8x32xbf16>
    %c56 = arith.constant 56 : index
    %c0_11 = arith.constant 0 : index
    %13 = vector.load %arg5[%c56, %c0_11] : memref<136x32xbf16, #tpu.memory_space<vmem>>, vector<8x32xbf16>
    tpu.vector_store %arg5[%c56, %c0_11], %12 {strides = array<i32>} : memref<136x32xbf16, #tpu.memory_space<vmem>>, vector<8x32xbf16>,
    %c32 = arith.constant 32 : index
    %c0_12 = arith.constant 0 : index
    %14 = vector.load %arg1[%c32, %c0_12] : memref<64x32xf32, #tpu.memory_space<vmem>>, vector<8x32xf32>
    %15 = arith.truncf %14 : vector<8x32xf32> to vector<8x32xbf16>
    %c72 = arith.constant 72 : index
    %c0_13 = arith.constant 0 : index
    %16 = vector.load %arg5[%c72, %c0_13] : memref<136x32xbf16, #tpu.memory_space<vmem>>, vector<8x32xbf16>
    tpu.vector_store %arg5[%c72, %c0_13], %15 {strides = array<i32>} : memref<136x32xbf16, #tpu.memory_space<vmem>>, vector<8x32xbf16>,
    %c40_14 = arith.constant 40 : index
    %c0_15 = arith.constant 0 : index
    %17 = vector.load %arg1[%c40_14, %c0_15] : memref<64x32xf32, #tpu.memory_space<vmem>>, vector<8x32xf32>
    %18 = arith.truncf %17 : vector<8x32xf32> to vector<8x32xbf16>
    %c88 = arith.constant 88 : index
    %c0_16 = arith.constant 0 : index
    %19 = vector.load %arg5[%c88, %c0_16] : memref<136x32xbf16, #tpu.memory_space<vmem>>, vector<8x32xbf16>
    tpu.vector_store %arg5[%c88, %c0_16], %18 {strides = array<i32>} : memref<136x32xbf16, #tpu.memory_space<vmem>>, vector<8x32xbf16>,
    %c48 = arith.constant 48 : index
    %c0_17 = arith.constant 0 : index
    %20 = vector.load %arg1[%c48, %c0_17] : memref<64x32xf32, #tpu.memory_space<vmem>>, vector<8x32xf32>
    %21 = arith.truncf %20 : vector<8x32xf32> to vector<8x32xbf16>
    %c104 = arith.constant 104 : index
    %c0_18 = arith.constant 0 : index
    %22 = vector.load %arg5[%c104, %c0_18] : memref<136x32xbf16, #tpu.memory_space<vmem>>, vector<8x32xbf16>
    tpu.vector_store %arg5[%c104, %c0_18], %21 {strides = array<i32>} : memref<136x32xbf16, #tpu.memory_space<vmem>>, vector<8x32xbf16>,
    %c56_19 = arith.constant 56 : index
    %c0_20 = arith.constant 0 : index
    %23 = vector.load %arg1[%c56_19, %c0_20] : memref<64x32xf32, #tpu.memory_space<vmem>>, vector<8x32xf32>
    %24 = arith.truncf %23 : vector<8x32xf32> to vector<8x32xbf16>
    %c120 = arith.constant 120 : index
    %c0_21 = arith.constant 0 : index
    %25 = vector.load %arg5[%c120, %c0_21] : memref<136x32xbf16, #tpu.memory_space<vmem>>, vector<8x32xbf16>
    tpu.vector_store %arg5[%c120, %c0_21], %24 {strides = array<i32>} : memref<136x32xbf16, #tpu.memory_space<vmem>>, vector<8x32xbf16>,
    %c4 = arith.constant 4 : index
    %c0_22 = arith.constant 0 : index
    %26 = vector.load %arg5[%c4, %c0_22] : memref<136x32xbf16, #tpu.memory_space<vmem>>, vector<128x32xbf16>
    %c0_23 = arith.constant 0 : index
    %c0_24 = arith.constant 0 : index
    %27 = vector.load %arg2[%c0_23, %c0_24] : memref<160x128xbf16, #tpu.memory_space<vmem>>, vector<32x128xbf16>
    %cst_25 = arith.constant dense<0.000000e+00> : vector<128x128xf32>
    %28 = tpu.matmul %26, %27, %cst_25 {dimension_numbers = #tpu.dot_dimension_numbers<[1], [0], [0], [1], [0, 0, 1, 1], [], []>} : vector<128x32xbf16>, vector<32x128xbf16>, vector<128x128xf32> -> vector<128x128xf32>
    %c5 = arith.constant 5 : index
    %c0_26 = arith.constant 0 : index
    %29 = vector.load %arg5[%c5, %c0_26] : memref<136x32xbf16, #tpu.memory_space<vmem>>, vector<128x32xbf16>
    %c32_27 = arith.constant 32 : index
    %c0_28 = arith.constant 0 : index
    %30 = vector.load %arg2[%c32_27, %c0_28] : memref<160x128xbf16, #tpu.memory_space<vmem>>, vector<32x128xbf16>
    %cst_29 = arith.constant dense<0.000000e+00> : vector<128x128xf32>
    %31 = tpu.matmul %29, %30, %cst_29 {dimension_numbers = #tpu.dot_dimension_numbers<[1], [0], [0], [1], [0, 0, 1, 1], [], []>} : vector<128x32xbf16>, vector<32x128xbf16>, vector<128x128xf32> -> vector<128x128xf32>
    %32 = arith.addf %28, %31 : vector<128x128xf32>
    %c6 = arith.constant 6 : index
    %c0_30 = arith.constant 0 : index
    %33 = vector.load %arg5[%c6, %c0_30] : memref<136x32xbf16, #tpu.memory_space<vmem>>, vector<128x32xbf16>
    %c64 = arith.constant 64 : index
    %c0_31 = arith.constant 0 : index
    %34 = vector.load %arg2[%c64, %c0_31] : memref<160x128xbf16, #tpu.memory_space<vmem>>, vector<32x128xbf16>
    %cst_32 = arith.constant dense<0.000000e+00> : vector<128x128xf32>
    %35 = tpu.matmul %33, %34, %cst_32 {dimension_numbers = #tpu.dot_dimension_numbers<[1], [0], [0], [1], [0, 0, 1, 1], [], []>} : vector<128x32xbf16>, vector<32x128xbf16>, vector<128x128xf32> -> vector<128x128xf32>
    %36 = arith.addf %32, %35 : vector<128x128xf32>
    %c7 = arith.constant 7 : index
    %c0_33 = arith.constant 0 : index
    %37 = vector.load %arg5[%c7, %c0_33] : memref<136x32xbf16, #tpu.memory_space<vmem>>, vector<128x32xbf16>
    %c96 = arith.constant 96 : index
    %c0_34 = arith.constant 0 : index
    %38 = vector.load %arg2[%c96, %c0_34] : memref<160x128xbf16, #tpu.memory_space<vmem>>, vector<32x128xbf16>
    %cst_35 = arith.constant dense<0.000000e+00> : vector<128x128xf32>
    %39 = tpu.matmul %37, %38, %cst_35 {dimension_numbers = #tpu.dot_dimension_numbers<[1], [0], [0], [1], [0, 0, 1, 1], [], []>} : vector<128x32xbf16>, vector<32x128xbf16>, vector<128x128xf32> -> vector<128x128xf32>
    %40 = arith.addf %36, %39 : vector<128x128xf32>
    %c8_36 = arith.constant 8 : index
    %c0_37 = arith.constant 0 : index
    %41 = vector.load %arg5[%c8_36, %c0_37] : memref<136x32xbf16, #tpu.memory_space<vmem>>, vector<128x32xbf16>
    %c128 = arith.constant 128 : index
    %c0_38 = arith.constant 0 : index
    %42 = vector.load %arg2[%c128, %c0_38] : memref<160x128xbf16, #tpu.memory_space<vmem>>, vector<32x128xbf16>
    %cst_39 = arith.constant dense<0.000000e+00> : vector<128x128xf32>
    %43 = tpu.matmul %41, %42, %cst_39 {dimension_numbers = #tpu.dot_dimension_numbers<[1], [0], [0], [1], [0, 0, 1, 1], [], []>} : vector<128x32xbf16>, vector<32x128xbf16>, vector<128x128xf32> -> vector<128x128xf32>
    %44 = arith.addf %40, %43 : vector<128x128xf32>
    %45 = tpu.iota {dimensions = array<i32: 0>} : vector<16x128xi32>
    %46 = tpu.iota {dimensions = array<i32: 1>} : vector<16x128xi32>
    %c16_i32 = arith.constant 16 : i32
    %47 = vector.broadcast %c16_i32 : i32 to vector<16x128xi32>
    %48 = arith.cmpi slt, %46, %47 : vector<16x128xi32>
    %c32_i32 = arith.constant 32 : i32
    %49 = vector.broadcast %c32_i32 : i32 to vector<16x128xi32>
    %50 = arith.cmpi slt, %46, %49 : vector<16x128xi32>
    %c1_i32 = arith.constant 1 : i32
    %c0_i32 = arith.constant 0 : i32
    %51 = vector.broadcast %c1_i32 : i32 to vector<16x128xi32>
    %52 = vector.broadcast %c0_i32 : i32 to vector<16x128xi32>
    %53 = arith.select %50, %51, %52 : vector<16x128xi1>, vector<16x128xi32>
    %c2_i32 = arith.constant 2 : i32
    %54 = vector.broadcast %c2_i32 : i32 to vector<16x128xi32>
    %55 = arith.select %48, %54, %53 : vector<16x128xi1>, vector<16x128xi32>
    %56 = arith.cmpi sge, %45, %55 : vector<16x128xi32>
    %c12_i32 = arith.constant 12 : i32
    %57 = vector.broadcast %c12_i32 : i32 to vector<16x128xi32>
    %58 = arith.cmpi slt, %45, %57 : vector<16x128xi32>
    %59 = arith.andi %56, %58 : vector<16x128xi1>
    %c0_40 = arith.constant 0 : index
    %c0_41 = arith.constant 0 : index
    %60 = vector.load %arg3[%c0_40, %c0_41] : memref<1x128xf32, #tpu.memory_space<vmem>>, vector<1x128xf32>
    %61 = vector.extract_strided_slice %44 {offsets = [0, 0], sizes = [16, 128], strides = [1, 1]} : vector<128x128xf32> to vector<16x128xf32>
    %cst_42 = arith.constant 0xFF800000 : f32
    %62 = vector.broadcast %cst_42 : f32 to vector<16x128xf32>
    %63 = arith.select %59, %61, %62 : vector<16x128xi1>, vector<16x128xf32>
    %cst_43 = arith.constant dense<0xFF800000> : vector<128xf32>
    %64 = vector.multi_reduction <maximumf>, %63, %cst_43 [0] : vector<16x128xf32> to vector<128xf32>
    %65 = vector.shape_cast %64 : vector<128xf32> to vector<1x128xf32>
    %66 = arith.addf %65, %60 : vector<1x128xf32>
    %cst_44 = arith.constant 0.000000e+00 : f32
    %67 = vector.broadcast %cst_44 : f32 to vector<1x128xf32>
    %68 = arith.maximumf %66, %67 : vector<1x128xf32>
    %c0_45 = arith.constant 0 : index
    %c0_46 = arith.constant 0 : index
    %69 = vector.load %arg4[%c0_45, %c0_46] : memref<8x128xf32, #tpu.memory_space<vmem>>, vector<1x128xf32>
    tpu.vector_store %arg4[%c0_45, %c0_46], %68 {strides = array<i32>} : memref<8x128xf32, #tpu.memory_space<vmem>>, vector<1x128xf32>,
    %70 = vector.extract_strided_slice %44 {offsets = [16, 0], sizes = [16, 128], strides = [1, 1]} : vector<128x128xf32> to vector<16x128xf32>
    %cst_47 = arith.constant 0xFF800000 : f32
    %71 = vector.broadcast %cst_47 : f32 to vector<16x128xf32>
    %72 = arith.select %59, %70, %71 : vector<16x128xi1>, vector<16x128xf32>
    %cst_48 = arith.constant dense<0xFF800000> : vector<128xf32>
    %73 = vector.multi_reduction <maximumf>, %72, %cst_48 [0] : vector<16x128xf32> to vector<128xf32>
    %74 = vector.shape_cast %73 : vector<128xf32> to vector<1x128xf32>
    %75 = arith.addf %74, %60 : vector<1x128xf32>
    %cst_49 = arith.constant 0.000000e+00 : f32
    %76 = vector.broadcast %cst_49 : f32 to vector<1x128xf32>
    %77 = arith.maximumf %75, %76 : vector<1x128xf32>
    %c1 = arith.constant 1 : index
    %c0_50 = arith.constant 0 : index
    %78 = vector.load %arg4[%c1, %c0_50] : memref<8x128xf32, #tpu.memory_space<vmem>>, vector<1x128xf32>
    tpu.vector_store %arg4[%c1, %c0_50], %77 {strides = array<i32>} : memref<8x128xf32, #tpu.memory_space<vmem>>, vector<1x128xf32>,
    %79 = vector.extract_strided_slice %44 {offsets = [32, 0], sizes = [16, 128], strides = [1, 1]} : vector<128x128xf32> to vector<16x128xf32>
    %cst_51 = arith.constant 0xFF800000 : f32
    %80 = vector.broadcast %cst_51 : f32 to vector<16x128xf32>
    %81 = arith.select %59, %79, %80 : vector<16x128xi1>, vector<16x128xf32>
    %cst_52 = arith.constant dense<0xFF800000> : vector<128xf32>
    %82 = vector.multi_reduction <maximumf>, %81, %cst_52 [0] : vector<16x128xf32> to vector<128xf32>
    %83 = vector.shape_cast %82 : vector<128xf32> to vector<1x128xf32>
    %84 = arith.addf %83, %60 : vector<1x128xf32>
    %cst_53 = arith.constant 0.000000e+00 : f32
    %85 = vector.broadcast %cst_53 : f32 to vector<1x128xf32>
    %86 = arith.maximumf %84, %85 : vector<1x128xf32>
    %c2 = arith.constant 2 : index
    %c0_54 = arith.constant 0 : index
    %87 = vector.load %arg4[%c2, %c0_54] : memref<8x128xf32, #tpu.memory_space<vmem>>, vector<1x128xf32>
    tpu.vector_store %arg4[%c2, %c0_54], %86 {strides = array<i32>} : memref<8x128xf32, #tpu.memory_space<vmem>>, vector<1x128xf32>,
    %88 = vector.extract_strided_slice %44 {offsets = [48, 0], sizes = [16, 128], strides = [1, 1]} : vector<128x128xf32> to vector<16x128xf32>
    %cst_55 = arith.constant 0xFF800000 : f32
    %89 = vector.broadcast %cst_55 : f32 to vector<16x128xf32>
    %90 = arith.select %59, %88, %89 : vector<16x128xi1>, vector<16x128xf32>
    %cst_56 = arith.constant dense<0xFF800000> : vector<128xf32>
    %91 = vector.multi_reduction <maximumf>, %90, %cst_56 [0] : vector<16x128xf32> to vector<128xf32>
    %92 = vector.shape_cast %91 : vector<128xf32> to vector<1x128xf32>
    %93 = arith.addf %92, %60 : vector<1x128xf32>
    %cst_57 = arith.constant 0.000000e+00 : f32
    %94 = vector.broadcast %cst_57 : f32 to vector<1x128xf32>
    %95 = arith.maximumf %93, %94 : vector<1x128xf32>
    %c3 = arith.constant 3 : index
    %c0_58 = arith.constant 0 : index
    %96 = vector.load %arg4[%c3, %c0_58] : memref<8x128xf32, #tpu.memory_space<vmem>>, vector<1x128xf32>
    tpu.vector_store %arg4[%c3, %c0_58], %95 {strides = array<i32>} : memref<8x128xf32, #tpu.memory_space<vmem>>, vector<1x128xf32>,
    %97 = vector.extract_strided_slice %44 {offsets = [64, 0], sizes = [16, 128], strides = [1, 1]} : vector<128x128xf32> to vector<16x128xf32>
    %cst_59 = arith.constant 0xFF800000 : f32
    %98 = vector.broadcast %cst_59 : f32 to vector<16x128xf32>
    %99 = arith.select %59, %97, %98 : vector<16x128xi1>, vector<16x128xf32>
    %cst_60 = arith.constant dense<0xFF800000> : vector<128xf32>
    %100 = vector.multi_reduction <maximumf>, %99, %cst_60 [0] : vector<16x128xf32> to vector<128xf32>
    %101 = vector.shape_cast %100 : vector<128xf32> to vector<1x128xf32>
    %102 = arith.addf %101, %60 : vector<1x128xf32>
    %cst_61 = arith.constant 0.000000e+00 : f32
    %103 = vector.broadcast %cst_61 : f32 to vector<1x128xf32>
    %104 = arith.maximumf %102, %103 : vector<1x128xf32>
    %c4_62 = arith.constant 4 : index
    %c0_63 = arith.constant 0 : index
    %105 = vector.load %arg4[%c4_62, %c0_63] : memref<8x128xf32, #tpu.memory_space<vmem>>, vector<1x128xf32>
    tpu.vector_store %arg4[%c4_62, %c0_63], %104 {strides = array<i32>} : memref<8x128xf32, #tpu.memory_space<vmem>>, vector<1x128xf32>,
    %106 = vector.extract_strided_slice %44 {offsets = [80, 0], sizes = [16, 128], strides = [1, 1]} : vector<128x128xf32> to vector<16x128xf32>
    %cst_64 = arith.constant 0xFF800000 : f32
    %107 = vector.broadcast %cst_64 : f32 to vector<16x128xf32>
    %108 = arith.select %59, %106, %107 : vector<16x128xi1>, vector<16x128xf32>
    %cst_65 = arith.constant dense<0xFF800000> : vector<128xf32>
    %109 = vector.multi_reduction <maximumf>, %108, %cst_65 [0] : vector<16x128xf32> to vector<128xf32>
    %110 = vector.shape_cast %109 : vector<128xf32> to vector<1x128xf32>
    %111 = arith.addf %110, %60 : vector<1x128xf32>
    %cst_66 = arith.constant 0.000000e+00 : f32
    %112 = vector.broadcast %cst_66 : f32 to vector<1x128xf32>
    %113 = arith.maximumf %111, %112 : vector<1x128xf32>
    %c5_67 = arith.constant 5 : index
    %c0_68 = arith.constant 0 : index
    %114 = vector.load %arg4[%c5_67, %c0_68] : memref<8x128xf32, #tpu.memory_space<vmem>>, vector<1x128xf32>
    tpu.vector_store %arg4[%c5_67, %c0_68], %113 {strides = array<i32>} : memref<8x128xf32, #tpu.memory_space<vmem>>, vector<1x128xf32>,
    %115 = vector.extract_strided_slice %44 {offsets = [96, 0], sizes = [16, 128], strides = [1, 1]} : vector<128x128xf32> to vector<16x128xf32>
    %cst_69 = arith.constant 0xFF800000 : f32
    %116 = vector.broadcast %cst_69 : f32 to vector<16x128xf32>
    %117 = arith.select %59, %115, %116 : vector<16x128xi1>, vector<16x128xf32>
    %cst_70 = arith.constant dense<0xFF800000> : vector<128xf32>
    %118 = vector.multi_reduction <maximumf>, %117, %cst_70 [0] : vector<16x128xf32> to vector<128xf32>
    %119 = vector.shape_cast %118 : vector<128xf32> to vector<1x128xf32>
    %120 = arith.addf %119, %60 : vector<1x128xf32>
    %cst_71 = arith.constant 0.000000e+00 : f32
    %121 = vector.broadcast %cst_71 : f32 to vector<1x128xf32>
    %122 = arith.maximumf %120, %121 : vector<1x128xf32>
    %c6_72 = arith.constant 6 : index
    %c0_73 = arith.constant 0 : index
    %123 = vector.load %arg4[%c6_72, %c0_73] : memref<8x128xf32, #tpu.memory_space<vmem>>, vector<1x128xf32>
    tpu.vector_store %arg4[%c6_72, %c0_73], %122 {strides = array<i32>} : memref<8x128xf32, #tpu.memory_space<vmem>>, vector<1x128xf32>,
    %124 = vector.extract_strided_slice %44 {offsets = [112, 0], sizes = [16, 128], strides = [1, 1]} : vector<128x128xf32> to vector<16x128xf32>
    %cst_74 = arith.constant 0xFF800000 : f32
    %125 = vector.broadcast %cst_74 : f32 to vector<16x128xf32>
    %126 = arith.select %59, %124, %125 : vector<16x128xi1>, vector<16x128xf32>
    %cst_75 = arith.constant dense<0xFF800000> : vector<128xf32>
    %127 = vector.multi_reduction <maximumf>, %126, %cst_75 [0] : vector<16x128xf32> to vector<128xf32>
    %128 = vector.shape_cast %127 : vector<128xf32> to vector<1x128xf32>
    %129 = arith.addf %128, %60 : vector<1x128xf32>
    %cst_76 = arith.constant 0.000000e+00 : f32
    %130 = vector.broadcast %cst_76 : f32 to vector<1x128xf32>
    %131 = arith.maximumf %129, %130 : vector<1x128xf32>
    %c7_77 = arith.constant 7 : index
    %c0_78 = arith.constant 0 : index
    %132 = vector.load %arg4[%c7_77, %c0_78] : memref<8x128xf32, #tpu.memory_space<vmem>>, vector<1x128xf32>
    tpu.vector_store %arg4[%c7_77, %c0_78], %131 {strides = array<i32>} : memref<8x128xf32, #tpu.memory_space<vmem>>, vector<1x128xf32>,
    return
  }
  func.func @transform_0(%arg0: i32) -> (i32, i32) {
    %c0_i32 = arith.constant 0 : i32
    %c0_i32_0 = arith.constant 0 : i32
    return %arg0, %c0_i32 : i32, i32
  }
  func.func @transform_1(%arg0: i32) -> (i32, i32) {
    %c0_i32 = arith.constant 0 : i32
    %c0_i32_0 = arith.constant 0 : i32
    %c0_i32_1 = arith.constant 0 : i32
    return %c0_i32, %c0_i32_0 : i32, i32
  }
  func.func @transform_2(%arg0: i32) -> (i32, i32) {
    %c0_i32 = arith.constant 0 : i32
    %c0_i32_0 = arith.constant 0 : i32
    %c0_i32_1 = arith.constant 0 : i32
    return %c0_i32, %c0_i32_0 : i32, i32
  }
  func.func @transform_3(%arg0: i32) -> (i32, i32) {
    %c0_i32 = arith.constant 0 : i32
    %c0_i32_0 = arith.constant 0 : i32
    return %arg0, %c0_i32 : i32, i32
  }
}

</mosaic_0001>

<bundles_post_ra>
// kernel: tpu_custom_call.1
= control target key start
LH: loop header
LB: loop body
LE: loop exit
PB: predicated region body
PF: predicated region fallthrough
CT: control target
= control target key end

     0   :  { %8 = vsyncpa [#allocation4], 0  ;;  %s1895_s0 = inlined_call_operand.vmem [shape: f32[128,32], index: 0, kind: input, shape index: {}]   ;;  %s1896_s1 = inlined_call_operand.vmem [shape: bf16[160,128], index: 1, kind: input, shape index: {}]   ;;  %s1897_s2 = inlined_call_operand.vmem [shape: f32[1,128], index: 2, kind: input, shape index: {}]   ;;  %s1898_s3 = inlined_call_operand.hbm [shape: f32[16,128], index: 3, kind: output, shape index: {}]  }
   0x1   :  { %10 = vsyncpa [#allocation4 + $0x1], 0  ;;  %s1447_s12 = smov 0   ;;  %s1449_s13 = smov 0  }
   0x2   :  { %s1451_s14 = smov 0   ;;  %s1453_s15 = smov 0  }
   0x3 LB: > { %s1137_s16 = sadd.s32 4294967295, %s1424_s15   ;;  %s1138_s17 = sadd.s32 4294967294, %s1424_s15   ;;  %s1424_s15 = sphi %s1453_s15, %s1906_s15   ;;  %s1420_s14 = sphi %s1451_s14, %s1905_s14   ;;  %s1416_s13 = sphi %s1449_s13, %s1904_s13   ;;  %s1412_s12 = sphi %s1447_s12, %s1903_s12  }
   0x4   : > { %s1470_s18 = sadd.s32 1, %s1424_s15   ;;  %s91_s19 = sadd.s32 1, %s1420_s14 }
   0x5   : > { %s88_s20 = ssub.s32 %s1424_s15, %s1470_s18  ;;  %p101_p0 = scmp.ne.s32.totalorder %s1420_s14, %s1416_s13 }
   0x6   : > { %p89_p1 = scmp.eq.s32.totalorder %s88_s20, 0  ;;  %p102_p2 = scmp.eq.s32.totalorder %s1137_s16, 1 }
   0x7   : > { %p107_p3 = scmp.ne.s32.totalorder %s1416_s13, %s1412_s12  ;;  %p108_p4 = scmp.eq.s32.totalorder %s1138_s17, 1 }
   0x8   : > { %s1480_s21 = scalar_select %p89_p1, %s1420_s14, %s91_s19  }
   0x9   : > { %p1482_p5 = por %p102_p2, %p101_p0  ;;  %p1486_p6 = por %p108_p4, %p107_p3 }
   0xa   : > { %p1141_p7 = scmp.ge.s32.totalorder %s1424_s15, 1  ;;  %p141_p8 = scmp.lt.s32.totalorder %s1424_s15, 3 }
   0xc   : > { %p142_p9 = pnand %p1141_p7, %p141_p8 }
   0xd   : > { %s1495_s26 = sshll.u32 (!%p142_p9), %s1137_s16, 3  ;;  %s162_s5 = sand.u32 (!%p142_p9), 1, %s1416_s13  }
   0xe   : > { %145 = sbr.rel (%p142_p9) target bundleno = 367 (0x16f), region = 32  ;;  %p166_p10 = scmp.lt.s32.totalorder (!%p142_p9), %s1495_s26, 15 }
   0xf   : > { %s1142_s8 = sshll.u32 (!%p142_p9), %s162_s5, 3  ;;  %s1074_s16 = scalar_lea.hbm (!%p142_p9), %s1898_s3, %s1495_s26 }
  0x10   : > { %s1809_s9 = scalar_lea.vmem (!%p142_p9), [#allocation3], %s1142_s8  ;;  %s1078_s19 = sshll.u32 (!%p142_p9), %s1074_s16, 4  ;;  %s1079_s19 = int_to_ptr.hbm [resolvable:$true] %s1078_s19 }
  0x11   : > { %s1076_s17 = sshll.u32 (!%p142_p9), %s1809_s9, 4  ;;  %s1064_s20 = scalar_lea.sflag (!%p142_p9), [#allocation4], %s162_s5  ;;  %s1077_s17 = int_to_ptr.vmem [resolvable:$true] %s1076_s17 }
  0x12   : > { %s1376_s24 = sshra.s32 (!%p142_p9), %s1079_s19, 4  ;;  %s1382_s28 = scalar_lea.hbm (!%p142_p9), %s1898_s3, 16  ;;  %s1377_s24 = int_to_ptr.hbm [resolvable:$true] %s1376_s24 }
  0x13   : > { %v1232_v0 = vld [vmem:[%s1896_s1 + $0x18] sm:$0xff]  ;;  %vm172_vm0 = vcmask 257024   ;;  %v1426_v1 = vmov 0   ;;  %v1231_v2 = vld [vmem:[%s1896_s1 + $0x10] sm:$0xff]  ;;  %s167_s29 = scalar_select %p166_p10, %s1495_s26, 15  ;;  %v1234_v3 = vld [vmem:[%s1896_s1 + $0x28] sm:$0xff] }
  0x14   : > { %177 = vst.msk [vmem:[#allocation2 + $0x10] sm:$0xf] %vm172_vm0, %v1426_v1  ;;  %1316 = vmatpush.bf16.msra.mxu1 %v1232_v0  ;;  %1317 = vmatpush.bf16.msra.mxu2 %v1232_v0  ;;  %v1236_v4 = vld [vmem:[%s1896_s1 + $0x38] sm:$0xff]  ;;  %v1230_v9 = vld [vmem:[%s1896_s1 + $0x8] sm:$0xff]  ;;  %vm283_vm1 = vsmask.f32 5376  ;;  %p1383_p0 = scmp.lt.s32.totalorder %s1377_s24, %s1898_s3 }
  0x15   : > { %178 = vst.msk [vmem:[#allocation2 + $0x14] sm:$0xf] %vm172_vm0, %v1426_v1  ;;  %1318 = vmatpush.bf16.msra.mxu3 %v1232_v0  ;;  %407 = vmatpush.bf16.msra.mxu0 %v1232_v0  ;;  %s1144_s30 = sshll.u32 %s167_s29, 3  ;;  %v1238_v10 = vld [vmem:[%s1896_s1 + $0x48] sm:$0xff]  ;;  %v1233_v34 = vld [vmem:[%s1896_s1 + $0x20] sm:$0xff]  ;;  %v1235_v35 = vld [vmem:[%s1896_s1 + $0x30] sm:$0xff] }
  0x16   : > { %179 = vst.msk [vmem:[#allocation2 + $0x18] sm:$0xf] %vm172_vm0, %v1426_v1  ;;  %s1515_s6 = scalar_lea.vmem %s1895_s0, %s1144_s30  ;;  %vm376_vm2 = vcmask 261120   ;;  %v1229_v41 = vld [vmem:[%s1896_s1] sm:$0xff]  ;;  %vm453_vm3 = vcmask 1045504   ;;  %vm564_vm4 = vcmask 1044480  }
  0x17   : > { %180 = vst.msk [vmem:[#allocation2 + $0x1c] sm:$0xf] %vm172_vm0, %v1426_v1  ;;  %v196_v5 = vld [vmem:[%s1515_s6 + $0x10] sm:$0xff]  ;;  %v199_v6 = vld [vmem:[%s1515_s6 + $0x18] sm:$0xff]  ;;  %v202_v11 = vld [vmem:[%s1515_s6 + $0x20] sm:$0xff]  ;;  %s1378_s25 = scalar_lea.hbm %s1377_s24, 8 }
  0x18   : > { %173 = vst.msk [vmem:[#allocation2] sm:$0xf] %vm172_vm0, %v1426_v1  ;;  %1319 = vmatpush.bf16.msra.mxu1 %v1231_v2  ;;  %1320 = vmatpush.bf16.msra.mxu2 %v1231_v2  ;;  %v197_v7 = vpack.c.bf16 %v196_v5, %v196_v5  ;;  %v200_v8 = vpack.c.bf16 %v199_v6, %v199_v6  ;;  %v205_v12 = vld [vmem:[%s1515_s6 + $0x28] sm:$0xff]  ;;  %v208_v13 = vld [vmem:[%s1515_s6 + $0x30] sm:$0xff]  ;;  %v211_v15 = vld [vmem:[%s1515_s6 + $0x38] sm:$0xff]  ;;  %p1379_p11 = scmp.ne.s32.totalorder %s1377_s24, %s1378_s25  ;;  %p1384_p1 = scmp.lt.s32.totalorder %s1382_s28, %s1378_s25 }
  0x19   : > { %174 = vst.msk [vmem:[#allocation2 + $0x4] sm:$0xf] %vm172_vm0, %v1426_v1  ;;  %1321 = vmatpush.bf16.msra.mxu3 %v1231_v2  ;;  %408 = vmatpush.bf16.msra.mxu0 %v1231_v2  ;;  %v203_v14 = vpack.c.bf16 %v202_v11, %v202_v11  ;;  %v206_v17 = vpack.c.bf16 %v205_v12, %v205_v12  ;;  %v190_v18 = vld [vmem:[%s1515_s6] sm:$0xff]  ;;  %v193_v23 = vld [vmem:[%s1515_s6 + $0x8] sm:$0xff]  ;;  %vm691_vm5 = vsmask.f32 4352 }
  0x1a   : > { %175 = vst.msk [vmem:[#allocation2 + $0x8] sm:$0xf] %vm172_vm0, %v1426_v1  ;;  %v209_v22 = vpack.c.bf16 %v208_v13, %v208_v13  ;;  %v212_v26 = vpack.c.bf16 %v211_v15, %v211_v15  ;;  %v191_v29 = vpack.c.bf16 %v190_v18, %v190_v18  ;;  %v194_v32 = vpack.c.bf16 %v193_v23, %v193_v23  ;;  %v1237_v42 = vld [vmem:[%s1896_s1 + $0x40] sm:$0xff]  ;;  %p1380_p12 = pnand %p1379_p11, %p1482_p5  ;;  %p1385_p2 = por %p1384_p1, %p1383_p0 }
  0x1b   : > { %176 = vst.msk [vmem:[#allocation2 + $0xc] sm:$0xf] %vm172_vm0, %v1426_v1 }
  0x1c   : > { %624 = vmatpush.bf16.msrb.mxu2 %v1234_v3  ;;  %181 = vst.msk [vmem:[#allocation2 + $0x20] sm:$0xf] %vm172_vm0, %v1426_v1  ;;  %513 = vmatpush.bf16.msrb.mxu1 %v1230_v9  ;;  %p1381_p13 = pneg %p1380_p12 }
  0x1d   : > { %779 = vmatpush.bf16.msrb.mxu3 %v1236_v4  ;;  %198 = vst.msk [vmem:[#allocation2 + $0x14] sm:$0xf] %vm172_vm0, %v197_v7  ;;  %892 = vmatpush.bf16.msrb.mxu0 %v1238_v10 }
  0x1e   : > { %201 = vst.msk [vmem:[#allocation2 + $0x1c] sm:$0xf] %vm172_vm0, %v200_v8  ;;  %p1386_p3 = pnand %p1385_p2, %p1381_p13 }
  0x1f   : > { %182 = vst.msk [vmem:[#allocation2 + $0x24] sm:$0xf] %vm172_vm0, %v1426_v1  ;;  %v214_v38 = vld [vmem:[#allocation2] sm:$0xc] }
  0x20   : > { %183 = vst.msk [vmem:[#allocation2 + $0x28] sm:$0xf] %vm172_vm0, %v1426_v1  ;;  %625 = vmatpush.bf16.msrb.mxu2 %v1233_v34  ;;  %v257_v49 = vunpack.c.l.b16 %v214_v38  ;;  %514 = vmatpush.bf16.msrb.mxu1 %v1229_v41 }
  0x21   : > { %184 = vst.msk [vmem:[#allocation2 + $0x2c] sm:$0xf] %vm172_vm0, %v1426_v1  ;;  %780 = vmatpush.bf16.msrb.mxu3 %v1235_v35  ;;  %893 = vmatpush.bf16.msrb.mxu0 %v1237_v42  ;;  %v556_v35 = vld [vmem:[#allocation2] sm:$0x8] }
  0x22   : > { %185 = vst.msk [vmem:[#allocation2 + $0x30] sm:$0xf] %vm172_vm0, %v1426_v1  ;;  %v562_v38 = vunpack.c.l.b16 %v556_v35 }
  0x23   : > { %186 = vst.msk [vmem:[#allocation2 + $0x34] sm:$0xf] %vm172_vm0, %v1426_v1 }
  0x24   : > { %v1555_v16 = vld [vmem:[#allocation2 + $0x10] sm:$0xff]   ;;  %187 = vst.msk [vmem:[#allocation2 + $0x38] sm:$0xf] %vm172_vm0, %v1426_v1 }
  0x25   : > { %v1560_v19 = vld [vmem:[#allocation2 + $0x18] sm:$0xff]   ;;  %v302_v20 = vshrl.u32 %v1555_v16, 16  ;;  %v305_v21 = vshll.u32 %v1555_v16, 16  ;;  %188 = vst.msk [vmem:[#allocation2 + $0x3c] sm:$0xf] %vm172_vm0, %v1426_v1 }
  0x26   : > { %v311_v24 = vshrl.u32 %v1560_v19, 16  ;;  %v314_v25 = vshll.u32 %v1560_v19, 16  ;;  %189 = vst.msk [vmem:[#allocation2 + $0x40] sm:$0xf] %vm172_vm0, %v1426_v1  ;;  %v1308_v35 = vld [vmem:[#allocation2 + $0x14] sm:$0xff]  }
  0x27   : > { %v304_v27 = vrot.slane %v302_v20, 2  ;;  %v307_v28 = vrot.slane %v305_v21, 3  ;;  %204 = vst.msk [vmem:[#allocation2 + $0x24] sm:$0xf] %vm172_vm0, %v203_v14 }
  0x28   : > { %v313_v30 = vrot.slane %v311_v24, 2  ;;  %v316_v31 = vrot.slane %v314_v25, 3  ;;  %207 = vst.msk [vmem:[#allocation2 + $0x2c] sm:$0xf] %vm172_vm0, %v206_v17 }
  0x29   : > { %v1581_v33 = vor.u32 %v307_v28, %v304_v27  ;;  %210 = vst.msk [vmem:[#allocation2 + $0x34] sm:$0xf] %vm172_vm0, %v209_v22 }
  0x2a   : > { %v317_v36 = vor.u32 %v316_v31, %v313_v30  ;;  %213 = vst.msk [vmem:[#allocation2 + $0x3c] sm:$0xf] %vm172_vm0, %v212_v26 }
  0x2b   : > { %192 = vst.msk [vmem:[#allocation2 + $0x4] sm:$0xf] %vm172_vm0, %v191_v29 }
  0x2c   : > { %v318_v37 = vsel %vm283_vm1, %v1581_v33, %v317_v36  ;;  %195 = vst.msk [vmem:[#allocation2 + $0xc] sm:$0xf] %vm172_vm0, %v194_v32 }
  0x2d   : > { %1155 = vmatmul.msk.bf16.vlgmr.msra.gmra.mxu1 %vm376_vm2, %v318_v37  ;;  %v235_v39 = vld [vmem:[#allocation2 + $0x40] sm:$0x7] }
  0x2e   : > { %v1596_v40 = vld [vmem:[#allocation2 + $0x20] sm:$0xff]   ;;  %v273_v50 = vunpack.c.l.b16 %v235_v39 }
  0x2f   : > { %v1604_v43 = vld [vmem:[#allocation2 + $0x28] sm:$0xff]   ;;  %v320_v44 = vshrl.u32 %v1596_v40, 16  ;;  %v323_v45 = vshll.u32 %v1596_v40, 16 }
  0x30   : > { %v329_v46 = vshrl.u32 %v1604_v43, 16  ;;  %v332_v47 = vshll.u32 %v1604_v43, 16  ;;  %v1610_v48 = vld [vmem:[#allocation2 + $0x30] sm:$0xff]   ;;  %v1642_v13 = vpack.c.b16 %v273_v50, %v273_v50 }
  0x31   : > { %v322_v51 = vrot.slane %v320_v44, 2  ;;  %v325_v52 = vrot.slane %v323_v45, 3  ;;  %v1616_v53 = vld [vmem:[#allocation2 + $0x38] sm:$0xff]   ;;  %v338_v54 = vshrl.u32 %v1610_v48, 16  ;;  %v341_v55 = vshll.u32 %v1610_v48, 16 }
  0x32   : > { %v331_v56 = vrot.slane %v329_v46, 2  ;;  %v334_v57 = vrot.slane %v332_v47, 3  ;;  %v347_v58 = vshrl.u32 %v1616_v53, 16  ;;  %v350_v59 = vshll.u32 %v1616_v53, 16  ;;  %v215_v60 = vld [vmem:[#allocation2 + $0x4] sm:$0xf] }
  0x33   : > { %v326_v61 = vor.u32 %v325_v52, %v322_v51  ;;  %v340_v62 = vrot.slane %v338_v54, 2  ;;  %v343_v63 = vrot.slane %v341_v55, 3  ;;  %v1630_v0 = vld [vmem:[#allocation2 + $0x8] sm:$0xff]   ;;  %v1632_v2 = vunpack.c.l.b16 %v215_v60 }
  0x34   : > { %v335_v3 = vor.u32 %v334_v57, %v331_v56  ;;  %v349_v4 = vrot.slane %v347_v58, 2  ;;  %v352_v5 = vrot.slane %v350_v59, 3  ;;  %v293_v6 = vshrl.u32 %v1630_v0, 16 }
  0x35   : > { %v344_v7 = vor.u32 %v343_v63, %v340_v62  ;;  %v274_v8 = vpack.c.b16 %v1632_v2, %v257_v49  ;;  %v296_v9 = vshll.u32 %v1630_v0, 16  ;;  %v327_v27 = vsel %vm283_vm1, %v317_v36, %v326_v61 }
  0x36   : > { %v336_v10 = vsel %vm283_vm1, %v326_v61, %v335_v3  ;;  %v353_v11 = vor.u32 %v352_v5, %v349_v4  ;;  %v295_v12 = vrot.slane %v293_v6, 2  ;;  %v356_v28 = vshrl.u32 %v1642_v13, 16 }
  0x37   : > { %1157 = vmatmul.msk.bf16.vlgmr.msra.gmra.mxu2 %vm376_vm2, %v336_v10  ;;  %v285_v14 = vshrl.u32 %v274_v8, 16  ;;  %v288_v15 = vshll.u32 %v274_v8, 16  ;;  %v298_v17 = vrot.slane %v296_v9, 3  ;;  %v359_v29 = vshll.u32 %v1642_v13, 16 }
  0x38   : > { %v354_v18 = vsel %vm283_vm1, %v344_v7, %v353_v11  ;;  %v358_v32 = vrot.slane %v356_v28, 2  ;;  %v345_v39 = vsel %vm283_vm1, %v335_v3, %v344_v7  ;;  %v454_v41 = vrot.slane %v274_v8, 2 }
  0x39   : > { %1159 = vmatmul.msk.bf16.vlgmr.msra.gmra.mxu3 %vm376_vm2, %v354_v18  ;;  %v287_v22 = vrot.slane %v285_v14, 2  ;;  %v290_v23 = vrot.slane %v288_v15, 3  ;;  %v299_v26 = vor.u32 %v298_v17, %v295_v12  ;;  %v361_v34 = vrot.slane %v359_v29, 3  ;;  %v1306_v29 = vld [vmem:[#allocation2 + $0xc] sm:$0xff]  }
  0x3a   : > { %v455_v42 = vrot.slane %v1630_v0, 2  ;;  %v563_v49 = vpack.c.b16 %v1632_v2, %v562_v38  ;;  %v700_v61 = vrot.slane %v293_v6, 3  ;;  %v701_v62 = vrot.slane %v296_v9, 4 }
  0x3b   : > { %v291_v30 = vor.u32 %v290_v23, %v287_v22  ;;  %v362_v37 = vor.u32 %v361_v34, %v358_v32  ;;  %v309_v56 = vsel %vm283_vm1, %v299_v26, %v1581_v33  ;;  %v566_v3 = vrot.slane %v1630_v0, 3 }
  0x3c   : > { %v456_v50 = vsel %vm453_vm3, %v454_v41, %v455_v42  ;;  %v693_v51 = vshrl.u32 %v563_v49, 16  ;;  %v696_v52 = vshll.u32 %v563_v49, 16  ;;  %v565_v63 = vrot.slane %v563_v49, 3  ;;  %v1312_v49 = vld [vmem:[#allocation2 + $0x24] sm:$0xff]  }
  0x3d   : > { %v300_v31 = vsel %vm283_vm1, %v291_v30, %v299_v26  ;;  %1156 = vmatmul.msk.bf16.gmra.mxu1 %vm376_vm2, %v327_v27  ;;  %v363_v36 = vsel %vm283_vm1, %v353_v11, %v362_v37  ;;  %v702_v5 = vor.u32 %v701_v62, %v700_v61  ;;  %v708_v33 = vrot.slane %v311_v24, 3  ;;  %v1310_v37 = vld [vmem:[#allocation2 + $0x1c] sm:$0xff]  }
  0x3e   : > { %1153 = vmatmul.msk.bf16.vlgmr.msra.gmra.mxu0 %vm376_vm2, %v300_v31  ;;  %v695_v57 = vrot.slane %v693_v51, 3  ;;  %v698_v60 = vrot.slane %v696_v52, 4  ;;  %v567_v7 = vsel %vm564_vm4, %v565_v63, %v566_v3  ;;  %v709_v8 = vrot.slane %v314_v25, 4  ;;  %v230_v62 = vld [vmem:[#allocation2 + $0x40] sm:$0x3] }
  0x3f   : > { %v1241_v6 = vunpack.c.l.b16 %v1630_v0  ;;  %v457_v9 = vrot.slane %v1555_v16, 2  ;;  %v704_v24 = vrot.slane %v302_v20, 3  ;;  %v705_v25 = vrot.slane %v305_v21, 4 }
  0x40   : > { %v699_v4 = vor.u32 %v698_v60, %v695_v57  ;;  %v710_v11 = vor.u32 %v709_v8, %v708_v33  ;;  %v459_v0 = vrot.slane %v1560_v19, 2  ;;  %v570_v15 = vrot.slane %v1560_v19, 3  ;;  %v1314_v60 = vld [vmem:[#allocation2 + $0x2c] sm:$0xff]  }
  0x41   : > { %v842_v12 = vpack.c.b16 %v1241_v6, %v1632_v2  ;;  %v458_v14 = vsel %vm453_vm3, %v455_v42, %v457_v9  ;;  %v461_v17 = vrot.slane %v1596_v40, 2  ;;  %v572_v2 = vrot.slane %v1596_v40, 3 }
  0x42   : > { %v703_v10 = vsel %vm691_vm5, %v699_v4, %v702_v5  ;;  %v568_v18 = vrot.slane %v1555_v16, 3  ;;  %v706_v20 = vor.u32 %v705_v25, %v704_v24  ;;  %v712_v21 = vrot.slane %v320_v44, 3 }
  0x43   : > { %v462_v22 = vsel %vm453_vm3, %v459_v0, %v461_v17  ;;  %v573_v23 = vsel %vm564_vm4, %v570_v15, %v572_v2  ;;  %v713_v27 = vrot.slane %v323_v45, 4  ;;  %v460_v30 = vsel %vm453_vm3, %v457_v9, %v459_v0 }
  0x44   : > { %v569_v26 = vsel %vm564_vm4, %v566_v3, %v568_v18  ;;  %v707_v19 = vsel %vm691_vm5, %v702_v5, %v706_v20  ;;  %v463_v44 = vrot.slane %v1604_v43, 2  ;;  %v574_v40 = vrot.slane %v1604_v43, 3  ;;  %v683_v3 = vld [vmem:[#allocation2 + $0x40] sm:$0xf] }
  0x45   : > { %v714_v28 = vor.u32 %v713_v27, %v712_v21  ;;  %v571_v32 = vsel %vm564_vm4, %v568_v18, %v570_v15  ;;  %v711_v34 = vsel %vm691_vm5, %v706_v20, %v710_v11  ;;  %v716_v38 = vrot.slane %v329_v46, 3 }
  0x46   : > { %v464_v45 = vsel %vm453_vm3, %v461_v17, %v463_v44  ;;  %v575_v31 = vsel %vm564_vm4, %v572_v2, %v574_v40  ;;  %v465_v42 = vrot.slane %v1610_v48, 2  ;;  %v720_v43 = vrot.slane %v338_v54, 3 }
  0x47   : > { %1158 = vmatmul.msk.bf16.gmra.mxu2 %vm376_vm2, %v345_v39  ;;  %v715_v16 = vsel %vm691_vm5, %v710_v11, %v714_v28  ;;  %v717_v39 = vrot.slane %v332_v47, 4  ;;  %v721_v46 = vrot.slane %v341_v55, 4  ;;  %v576_v47 = vrot.slane %v1610_v48, 3 }
  0x48   : > { %v467_v57 = vrot.slane %v1616_v53, 2  ;;  %v724_v48 = vrot.slane %v347_v58, 3  ;;  %v725_v55 = vrot.slane %v350_v59, 4  ;;  %v451_v63 = vunpack.c.l.b16 %v230_v62  ;;  %v1315_v59 = vld [vmem:[#allocation2 + $0x34] sm:$0xff]  }
  0x49   : > { %1160 = vmatmul.msk.bf16.gmra.mxu3 %vm376_vm2, %v363_v36  ;;  %v718_v36 = vor.u32 %v717_v39, %v716_v38  ;;  %v722_v51 = vor.u32 %v721_v46, %v720_v43  ;;  %v577_v52 = vsel %vm564_vm4, %v574_v40, %v576_v47  ;;  %v578_v4 = vrot.slane %v1616_v53, 3 }
  0x4a   : > { %v468_v54 = vsel %vm453_vm3, %v465_v42, %v467_v57  ;;  %v726_v5 = vor.u32 %v725_v55, %v724_v48  ;;  %v452_v33 = vpack.c.b16 %v451_v63, %v451_v63  ;;  %v689_v8 = vunpack.c.l.b16 %v683_v3 }
  0x4b   : > { %v719_v41 = vsel %vm691_vm5, %v714_v28, %v718_v36  ;;  %v580_v18 = vrot.slane %v1642_v13, 3  ;;  %v1266_v28 = vunpack.c.h.b16 %v1616_v53  ;;  %v951_v53 = vlaneseq }
  0x4c   : > { %v727_v6 = vsel %vm691_vm5, %v722_v51, %v726_v5  ;;  %v469_v9 = vrot.slane %v452_v33, 2  ;;  %v690_v11 = vpack.c.b16 %v689_v8, %v689_v8 }
  0x4d   : > { %1169 = vmatmul.msk.bf16.vlgmr.msrb.gmra.mxu1 %vm376_vm2, %v456_v50  ;;  %v466_v50 = vsel %vm453_vm3, %v463_v44, %v465_v42  ;;  %v581_v27 = vsel %vm564_vm4, %v578_v4, %v580_v18  ;;  %v849_v13 = vpack.c.b16 %v689_v8, %v1266_v28  ;;  %v952_v42 = vshrl.u32 %v951_v53, 7 }
  0x4e   : > { %1154 = vmatmul.msk.bf16.gmra.mxu0 %vm376_vm2, %v309_v56  ;;  %v723_v56 = vsel %vm691_vm5, %v718_v36, %v722_v51  ;;  %v729_v24 = vshrl.u32 %v690_v11, 16  ;;  %v732_v25 = vshll.u32 %v690_v11, 16 }
  0x50   : > { %v731_v17 = vrot.slane %v729_v24, 3  ;;  %v734_v2 = vrot.slane %v732_v25, 4 }
  0x57   : > { %1185 = vmatmul.msk.bf16.vlgmr.msrb.gmra.mxu2 %vm376_vm2, %v567_v7 }
  0x59   : > { %1201 = vmatmul.msk.bf16.vlgmr.msrb.gmra.mxu3 %vm376_vm2, %v703_v10  ;;  %v579_v10 = vsel %vm564_vm4, %v576_v47, %v578_v4  ;;  %v1784_v47 = vadd.s32 8, %v952_v42 }
  0x5b   : > { %vm963_vm9 = vcmp.lt.s32.totalorder %v1784_v47, 12 }
  0x5d   : > { %1170 = vmatmul.msk.bf16.gmra.mxu1 %vm376_vm2, %v458_v14  ;;  %v470_v14 = vsel %vm453_vm3, %v467_v57, %v469_v9 }
  0x5e   : > { %1217 = vmatmul.msk.bf16.vlgmr.msrb.gmra.mxu0 %vm376_vm2, %v842_v12 }
  0x67   : > { %1186 = vmatmul.msk.bf16.gmra.mxu2 %vm376_vm2, %v569_v26 }
  0x69   : > { %1202 = vmatmul.msk.bf16.gmra.mxu3 %vm376_vm2, %v707_v19 }
  0x6d   : > { %1171 = vmatmul.msk.bf16.gmra.mxu1 %vm376_vm2, %v460_v30 }
  0x6e   : > { %1218 = vmatmul.msk.bf16.gmra.mxu0 %vm376_vm2, %v1306_v29 }
  0x77   : > { %1187 = vmatmul.msk.bf16.gmra.mxu2 %vm376_vm2, %v571_v32 }
  0x79   : > { %1203 = vmatmul.msk.bf16.gmra.mxu3 %vm376_vm2, %v711_v34  ;;  %v955_v34 = vand.u32 127, %v951_v53 }
  0x7b   : > { %vm957_vm6 = vcmp.lt.s32.totalorder %v955_v34, 32  ;;  %vm956_vm7 = vcmp.lt.s32.totalorder %v955_v34, 16 }
  0x7d   : > { %1172 = vmatmul.msk.bf16.gmra.mxu1 %vm376_vm2, %v462_v22 }
  0x7e   : > { %1219 = vmatmul.msk.bf16.gmra.mxu0 %vm376_vm2, %v1308_v35 }
  0x87   : > { %1188 = vmatmul.msk.bf16.gmra.mxu2 %vm376_vm2, %v573_v23  ;;  %v735_v23 = vor.u32 %v734_v2, %v731_v17 }
  0x89   : > { %1204 = vmatmul.msk.bf16.gmra.mxu3 %vm376_vm2, %v715_v16  ;;  %v736_v19 = vsel %vm691_vm5, %v726_v5, %v735_v23 }
  0x8d   : > { %1173 = vmatmul.msk.bf16.gmra.mxu1 %vm376_vm2, %v464_v45 }
  0x8e   : > { %1220 = vmatmul.msk.bf16.gmra.mxu0 %vm376_vm2, %v1310_v37 }
  0x97   : > { %1189 = vmatmul.msk.bf16.gmra.mxu2 %vm376_vm2, %v575_v31 }
  0x99   : > { %1205 = vmatmul.msk.bf16.gmra.mxu3 %vm376_vm2, %v719_v41 }
  0x9d   : > { %1174 = vmatmul.msk.bf16.gmra.mxu1 %vm376_vm2, %v466_v50 }
  0x9e   : > { %1221 = vmatmul.msk.bf16.gmra.mxu0 %vm376_vm2, %v1312_v49  ;;  %v958_v49 = vsel %vm957_vm6, 1, %v1426_v1 }
  0xa7   : > { %1190 = vmatmul.msk.bf16.gmra.mxu2 %vm376_vm2, %v577_v52  ;;  %v959_v52 = vsel %vm956_vm7, 2, %v958_v49 }
  0xa8   : > { %vm1786_vm8 = vcmp.ge.s32.totalorder %v952_v42, %v959_v52 }
  0xa9   : > { %1206 = vmatmul.msk.bf16.gmra.mxu3 %vm376_vm2, %v723_v56 }
  0xaa   : > { %v1737_v61 = vpop.f32.mrf.mxu1 }
  0xad   : > { %1175 = vmatmul.msk.bf16.gmra.mxu1 %vm376_vm2, %v468_v54 }
  0xae   : > { %1222 = vmatmul.msk.bf16.gmra.mxu0 %vm376_vm2, %v1314_v60 }
  0xb2   : > { %v1747_v7 = vpop.f32.mrf.mxu1 }
  0xb7   : > { %1191 = vmatmul.msk.bf16.gmra.mxu2 %vm376_vm2, %v579_v10 }
  0xb9   : > { %1207 = vmatmul.msk.bf16.gmra.mxu3 %vm376_vm2, %v727_v6 }
  0xba   : > { %v1753_v58 = vpop.f32.mrf.mxu2  ;;  %v1755_v12 = vpop.f32.mrf.mxu1 }
  0xbb   : > { %v410_v0 = vpop.f32.mrf.mxu0 }
  0xbc   : > { %v1758_v15 = vpop.f32.mrf.mxu3 }
  0xbd   : > { %1176 = vmatmul.msk.bf16.gmra.mxu1 %vm376_vm2, %v470_v14 }
  0xbe   : > { %1223 = vmatmul.msk.bf16.gmra.mxu0 %vm376_vm2, %v1315_v59 }
  0xc2   : > { %v1763_v22 = vpop.f32.mrf.mxu2  ;;  %v1765_v20 = vpop.f32.mrf.mxu1 }
  0xc3   : > { %v412_v26 = vpop.f32.mrf.mxu0 }
  0xc4   : > { %v1767_v21 = vpop.f32.mrf.mxu3 }
  0xc7   : > { %1192 = vmatmul.msk.bf16.gmra.mxu2 %vm376_vm2, %v581_v27  ;;  %v1799_v27 = vld [vmem:[%s1897_s2] sm:$0x1] }
  0xc9   : > { %1208 = vmatmul.msk.bf16.gmra.mxu3 %vm376_vm2, %v736_v19 }
  0xca   : > { %v1774_v16 = vpop.f32.mrf.mxu2  ;;  %v516_v29 = vpop.f32.mrf.mxu1 }
  0xcb   : > { %v415_v30 = vpop.f32.mrf.mxu0  ;;  %v517_v38 = vadd.f32 %v516_v29, %v410_v0 }
  0xcc   : > { %v1776_v44 = vpop.f32.mrf.mxu3 }
  0xce   : > { %1224 = vmatmul.msk.bf16.gmra.mxu0 %vm376_vm2, %v849_v13 }
  0xd2   : > { %v1779_v40 = vpop.f32.mrf.mxu2  ;;  %v518_v45 = vpop.f32.mrf.mxu1 }
  0xd3   : > { %v417_v31 = vpop.f32.mrf.mxu0  ;;  %v519_v43 = vadd.f32 %v518_v45, %v412_v26 }
  0xd4   : > { %v1781_v32 = vpop.f32.mrf.mxu3 }
  0xda   : > { %v627_v35 = vpop.f32.mrf.mxu2  ;;  %v521_v37 = vpop.f32.mrf.mxu1 }
  0xdb   : > { %v895_v39 = vpop.f32.mrf.mxu0  ;;  %v667_v41 = vadd.f32 %v627_v35, %v517_v38  ;;  %v522_v33 = vadd.f32 %v521_v37, %v415_v30 }
  0xdc   : > { %v782_v36 = vpop.f32.mrf.mxu3 }
  0xdd   : > { %v822_v50 = vadd.f32 %v782_v36, %v667_v41 }
  0xdf   : > { %v935_v54 = vadd.f32 %v895_v39, %v822_v50 }
  0xe1   : > { %v967_v1 = vsel %vm1786_vm8, %v935_v54, -inf }
  0xe2   : > { %v629_v46 = vpop.f32.mrf.mxu2  ;;  %v523_v51 = vpop.f32.mrf.mxu1 }
  0xe3   : > { %v897_v56 = vpop.f32.mrf.mxu0  ;;  %v668_v57 = vadd.f32 %v629_v46, %v519_v43  ;;  %v524_v24 = vadd.f32 %v523_v51, %v417_v31 }
  0xe4   : > { %v784_v60 = vpop.f32.mrf.mxu3 }
  0xe5   : > { %v823_v62 = vadd.f32 %v784_v60, %v668_v57 }
  0xe7   : > { %v936_v55 = vadd.f32 %v897_v56, %v823_v62 }
  0xe9   : > { %v968_v63 = vsel %vm963_vm9, %v936_v55, -inf }
  0xea   : > { %v969_v3 = vmax.f32 %v967_v1, %v968_v63  ;;  %v632_v4 = vpop.f32.mrf.mxu2  ;;  %v526_v5 = vpop.f32.mrf.mxu1 }
  0xeb   : > { %v900_v8 = vpop.f32.mrf.mxu0  ;;  %v669_v9 = vadd.f32 %v632_v4, %v522_v33  ;;  %v527_v38 = vadd.f32 %v526_v5, %v1737_v61 }
  0xec   : > { %v970_v10 = vrot.slane %v969_v3, 4  ;;  %v787_v6 = vpop.f32.mrf.mxu3 }
  0xed   : > { %v824_v14 = vadd.f32 %v787_v6, %v669_v9 }
  0xee   : > { %v971_v11 = vmax.f32 %v969_v3, %v970_v10 }
  0xef   : > { %v937_v19 = vadd.f32 %v900_v8, %v824_v14 }
  0xf0   : > { %v972_v59 = vrot.slane %v971_v11, 2 }
  0xf1   : > { %v979_v45 = vsel %vm1786_vm8, %v937_v19, -inf }
  0xf2   : > { %v973_v25 = vmax.f32 %v971_v11, %v972_v59  ;;  %v634_v0 = vpop.f32.mrf.mxu2  ;;  %v528_v17 = vpop.f32.mrf.mxu1 }
  0xf3   : > { %v902_v2 = vpop.f32.mrf.mxu0  ;;  %v670_v18 = vadd.f32 %v634_v0, %v524_v24  ;;  %v529_v46 = vadd.f32 %v528_v17, %v1747_v7 }
  0xf4   : > { %v974_v23 = vrot.slane %v973_v25, 1  ;;  %v789_v26 = vpop.f32.mrf.mxu3 }
  0xf5   : > { %v825_v28 = vadd.f32 %v789_v26, %v670_v18 }
  0xf6   : > { %v975_v13 = vmax.f32 %v973_v25, %v974_v23 }
  0xf7   : > { %v938_v29 = vadd.f32 %v902_v2, %v825_v28 }
  0xf8   : > { %v976_v30 = vadd.f32 %v975_v13, %v1799_v27 }
  0xf9   : > { %v980_v31 = vsel %vm963_vm9, %v938_v29, -inf }
  0xfa   : > { %v977_v53 = vmax.f32 %v976_v30, 0.0  ;;  %v981_v34 = vmax.f32 %v979_v45, %v980_v31  ;;  %v637_v35 = vpop.f32.mrf.mxu2  ;;  %v531_v37 = vpop.f32.mrf.mxu1 }
  0xfb   : > { %v905_v39 = vpop.f32.mrf.mxu0  ;;  %v671_v42 = vadd.f32 %v637_v35, %v527_v38  ;;  %v532_v6 = vadd.f32 %v531_v37, %v1755_v12 }
  0xfc   : > { %978 = vst [vmem:[%s1809_s9] sm:$0x1] %v977_v53  ;;  %v982_v36 = vrot.slane %v981_v34, 4  ;;  %v792_v41 = vpop.f32.mrf.mxu3 }
  0xfd   : > { %v826_v43 = vadd.f32 %v792_v41, %v671_v42 }
  0xfe   : > { %v983_v49 = vmax.f32 %v981_v34, %v982_v36 }
  0xff   : > { %v939_v62 = vadd.f32 %v905_v39, %v826_v43 }
 0x100   : > { %v984_v50 = vrot.slane %v983_v49, 2 }
 0x101   : > { %v991_v4 = vsel %vm1786_vm8, %v939_v62, -inf }
 0x102   : > { %v985_v51 = vmax.f32 %v983_v49, %v984_v50  ;;  %v639_v52 = vpop.f32.mrf.mxu2  ;;  %v533_v56 = vpop.f32.mrf.mxu1 }
 0x103   : > { %v907_v57 = vpop.f32.mrf.mxu0  ;;  %v672_v60 = vadd.f32 %v639_v52, %v529_v46  ;;  %v534_v17 = vadd.f32 %v533_v56, %v1765_v20 }
 0x104   : > { %v986_v61 = vrot.slane %v985_v51, 1  ;;  %v794_v54 = vpop.f32.mrf.mxu3 }
 0x105   : > { %v827_v55 = vadd.f32 %v794_v54, %v672_v60 }
 0x106   : > { %v987_v1 = vmax.f32 %v985_v51, %v986_v61 }
 0x107   : > { %v940_v63 = vadd.f32 %v907_v57, %v827_v55 }
 0x108   : > { %v988_v3 = vadd.f32 %v987_v1, %v1799_v27 }
 0x109   : > { %v992_v7 = vsel %vm963_vm9, %v940_v63, -inf }
 0x10a   : > { %v989_v5 = vmax.f32 %v988_v3, 0.0  ;;  %v993_v33 = vmax.f32 %v991_v4, %v992_v7  ;;  %v642_v8 = vpop.f32.mrf.mxu2  ;;  %v536_v10 = vpop.f32.mrf.mxu1 }
 0x10b   : > { %v910_v9 = vpop.f32.mrf.mxu0  ;;  %v673_v14 = vadd.f32 %v642_v8, %v532_v6  ;;  %v537_v38 = vadd.f32 %v536_v10, %v1753_v58 }
 0x10c   : > { %990 = vst [vmem:[%s1809_s9 + $0x1] sm:$0x1] %v989_v5  ;;  %v994_v11 = vrot.slane %v993_v33, 4  ;;  %v797_v59 = vpop.f32.mrf.mxu3 }
 0x10d   : > { %v828_v0 = vadd.f32 %v797_v59, %v673_v14 }
 0x10e   : > { %v995_v24 = vmax.f32 %v993_v33, %v994_v11 }
 0x10f   : > { %v941_v29 = vadd.f32 %v910_v9, %v828_v0 }
 0x110   : > { %v996_v25 = vrot.slane %v995_v24, 2 }
 0x111   : > { %v1003_v53 = vsel %vm1786_vm8, %v941_v29, -inf }
 0x112   : > { %v997_v2 = vmax.f32 %v995_v24, %v996_v25  ;;  %v644_v18 = vpop.f32.mrf.mxu2  ;;  %v538_v23 = vpop.f32.mrf.mxu1 }
 0x113   : > { %v912_v26 = vpop.f32.mrf.mxu0  ;;  %v674_v19 = vadd.f32 %v644_v18, %v534_v17  ;;  %v539_v51 = vadd.f32 %v538_v23, %v1763_v22 }
 0x114   : > { %v998_v28 = vrot.slane %v997_v2, 1  ;;  %v799_v13 = vpop.f32.mrf.mxu3 }
 0x115   : > { %v829_v12 = vadd.f32 %v799_v13, %v674_v19 }
 0x116   : > { %v999_v30 = vmax.f32 %v997_v2, %v998_v28 }
 0x117   : > { %v942_v45 = vadd.f32 %v912_v26, %v829_v12 }
 0x118   : > { %v1000_v31 = vadd.f32 %v999_v30, %v1799_v27 }
 0x119   : > { %v1004_v20 = vsel %vm963_vm9, %v942_v45, -inf }
 0x11a   : > { %v1001_v34 = vmax.f32 %v1000_v31, 0.0  ;;  %v1005_v35 = vmax.f32 %v1003_v53, %v1004_v20  ;;  %v647_v37 = vpop.f32.mrf.mxu2  ;;  %v541_v42 = vpop.f32.mrf.mxu1 }
 0x11b   : > { %v915_v39 = vpop.f32.mrf.mxu0  ;;  %v675_v49 = vadd.f32 %v647_v37, %v537_v38  ;;  %v542_v8 = vadd.f32 %v541_v42, %v1774_v16 }
 0x11c   : > { %1002 = vst [vmem:[%s1809_s9 + $0x2] sm:$0x1] %v1001_v34  ;;  %v1006_v36 = vrot.slane %v1005_v35, 4  ;;  %v802_v41 = vpop.f32.mrf.mxu3 }
 0x11d   : > { %v830_v46 = vadd.f32 %v802_v41, %v675_v49 }
 0x11e   : > { %v1007_v50 = vmax.f32 %v1005_v35, %v1006_v36 }
 0x11f   : > { %v943_v62 = vadd.f32 %v915_v39, %v830_v46 }
 0x120   : > { %v1008_v43 = vrot.slane %v1007_v50, 2 }
 0x121   : > { %v1015_v4 = vsel %vm1786_vm8, %v943_v62, -inf }
 0x122   : > { %v1009_v52 = vmax.f32 %v1007_v50, %v1008_v43  ;;  %v649_v56 = vpop.f32.mrf.mxu2  ;;  %v543_v1 = vpop.f32.mrf.mxu1 }
 0x123   : > { %v917_v57 = vpop.f32.mrf.mxu0  ;;  %v676_v60 = vadd.f32 %v649_v56, %v539_v51  ;;  %v544_v0 = vadd.f32 %v543_v1, %v1779_v40 }
 0x124   : > { %v1010_v61 = vrot.slane %v1009_v52, 1  ;;  %v804_v54 = vpop.f32.mrf.mxu3 }
 0x125   : > { %v831_v58 = vadd.f32 %v804_v54, %v676_v60 }
 0x126   : > { %v1011_v55 = vmax.f32 %v1009_v52, %v1010_v61 }
 0x127   : > { %v944_v63 = vadd.f32 %v917_v57, %v831_v58 }
 0x128   : > { %v1012_v3 = vadd.f32 %v1011_v55, %v1799_v27 }
 0x129   : > { %v1016_v22 = vsel %vm963_vm9, %v944_v63, -inf }
 0x12a   : > { %v1013_v7 = vmax.f32 %v1012_v3, 0.0  ;;  %v1017_v5 = vmax.f32 %v1015_v4, %v1016_v22  ;;  %v652_v33 = vpop.f32.mrf.mxu2  ;;  %v546_v24 = vpop.f32.mrf.mxu1 }
 0x12b   : > { %v920_v10 = vpop.f32.mrf.mxu0  ;;  %v677_v11 = vadd.f32 %v652_v33, %v542_v8  ;;  %v547_v34 = vadd.f32 %v546_v24, %v1758_v15 }
 0x12c   : > { %1014 = vst [vmem:[%s1809_s9 + $0x3] sm:$0x1] %v1013_v7  ;;  %v1018_v6 = vrot.slane %v1017_v5, 4  ;;  %v807_v9 = vpop.f32.mrf.mxu3 }
 0x12d   : > { %v832_v25 = vadd.f32 %v807_v9, %v677_v11 }
 0x12e   : > { %v1019_v59 = vmax.f32 %v1017_v5, %v1018_v6 }
 0x12f   : > { %v945_v28 = vadd.f32 %v920_v10, %v832_v25 }
 0x130   : > { %v1020_v14 = vrot.slane %v1019_v59, 2 }
 0x131   : > { %v1027_v30 = vsel %vm1786_vm8, %v945_v28, -inf }
 0x132   : > { %v1021_v17 = vmax.f32 %v1019_v59, %v1020_v14  ;;  %v654_v2 = vpop.f32.mrf.mxu2  ;;  %v548_v20 = vpop.f32.mrf.mxu1 }
 0x133   : > { %v922_v18 = vpop.f32.mrf.mxu0  ;;  %v678_v23 = vadd.f32 %v654_v2, %v544_v0  ;;  %v549_v49 = vadd.f32 %v548_v20, %v1767_v21 }
 0x134   : > { %v1022_v26 = vrot.slane %v1021_v17, 1  ;;  %v809_v19 = vpop.f32.mrf.mxu3 }
 0x135   : > { %v833_v16 = vadd.f32 %v809_v19, %v678_v23 }
 0x136   : > { %v1023_v13 = vmax.f32 %v1021_v17, %v1022_v26 }
 0x137   : > { %v946_v29 = vadd.f32 %v922_v18, %v833_v16 }
 0x138   : > { %v1024_v12 = vadd.f32 %v1023_v13, %v1799_v27 }
 0x139   : > { %v1028_v45 = vsel %vm963_vm9, %v946_v29, -inf }
 0x13a   : > { %v1025_v40 = vmax.f32 %v1024_v12, 0.0  ;;  %v1029_v31 = vmax.f32 %v1027_v30, %v1028_v45  ;;  %v657_v53 = vpop.f32.mrf.mxu2  ;;  %v551_v57 = vpop.f32.mrf.mxu1 }
 0x13b   : > { %v925_v35 = vpop.f32.mrf.mxu0  ;;  %v679_v39 = vadd.f32 %v657_v53, %v547_v34  ;;  %v552_v3 = vadd.f32 %v551_v57, %v1776_v44 }
 0x13c   : > { %1026 = vst [vmem:[%s1809_s9 + $0x4] sm:$0x1] %v1025_v40  ;;  %v1030_v37 = vrot.slane %v1029_v31, 4  ;;  %v812_v38 = vpop.f32.mrf.mxu3 }
 0x13d   : > { %v834_v42 = vadd.f32 %v812_v38, %v679_v39 }
 0x13e   : > { %v1031_v36 = vmax.f32 %v1029_v31, %v1030_v37 }
 0x13f   : > { %v947_v60 = vadd.f32 %v925_v35, %v834_v42 }
 0x140   : > { %v1032_v41 = vrot.slane %v1031_v36, 2 }
 0x141   : > { %v1039_v58 = vsel %vm1786_vm8, %v947_v60, -inf }
 0x142   : > { %v1033_v50 = vmax.f32 %v1031_v36, %v1032_v41  ;;  %v659_v43 = vpop.f32.mrf.mxu2  ;;  %v553_v8 = vpop.f32.mrf.mxu1 }
 0x143   : > { %v927_v46 = vpop.f32.mrf.mxu0  ;;  %v680_v51 = vadd.f32 %v659_v43, %v549_v49  ;;  %v554_v9 = vadd.f32 %v553_v8, %v1781_v32 }
 0x144   : > { %v1034_v52 = vrot.slane %v1033_v50, 1  ;;  %v814_v56 = vpop.f32.mrf.mxu3 }
 0x145   : > { %v835_v15 = vadd.f32 %v814_v56, %v680_v51 }
 0x146   : > { %v1035_v61 = vmax.f32 %v1033_v50, %v1034_v52 }
 0x147   : > { %v948_v54 = vadd.f32 %v927_v46, %v835_v15 }
 0x148   : > { %v1036_v62 = vadd.f32 %v1035_v61, %v1799_v27 }
 0x149   : > { %v1040_v21 = vsel %vm963_vm9, %v948_v54, -inf }
 0x14a   : > { %v1037_v55 = vmax.f32 %v1036_v62, 0.0  ;;  %v1041_v1 = vmax.f32 %v1039_v58, %v1040_v21  ;;  %v662_v63 = vpop.f32.mrf.mxu2 }
 0x14b   : > { %v930_v22 = vpop.f32.mrf.mxu0  ;;  %v681_v5 = vadd.f32 %v662_v63, %v552_v3 }
 0x14c   : > { %1038 = vst [vmem:[%s1809_s9 + $0x5] sm:$0x1] %v1037_v55  ;;  %v1042_v4 = vrot.slane %v1041_v1, 4  ;;  %v817_v7 = vpop.f32.mrf.mxu3 }
 0x14d   : > { %v836_v6 = vadd.f32 %v817_v7, %v681_v5 }
 0x14e   : > { %v1043_v33 = vmax.f32 %v1041_v1, %v1042_v4 }
 0x14f   : > { %v949_v0 = vadd.f32 %v930_v22, %v836_v6 }
 0x150   : > { %v1044_v10 = vrot.slane %v1043_v33, 2 }
 0x151   : > { %v1051_v26 = vsel %vm1786_vm8, %v949_v0, -inf }
 0x152   : > { %v1045_v11 = vmax.f32 %v1043_v33, %v1044_v10  ;;  %v664_v59 = vpop.f32.mrf.mxu2 }
 0x153   : > { %v682_v14 = vadd.f32 %v664_v59, %v554_v9  ;;  %v932_v2 = vpop.f32.mrf.mxu0 }
 0x154   : > { %v1046_v24 = vrot.slane %v1045_v11, 1  ;;  %v819_v25 = vpop.f32.mrf.mxu3 }
 0x155   : > { %v837_v44 = vadd.f32 %v819_v25, %v682_v14 }
 0x156   : > { %v1047_v17 = vmax.f32 %v1045_v11, %v1046_v24 }
 0x157   : > { %v950_v18 = vadd.f32 %v932_v2, %v837_v44 }
 0x158   : > { %v1048_v23 = vadd.f32 %v1047_v17, %v1799_v27 }
 0x159   : > { %v1052_v32 = vsel %vm963_vm9, %v950_v18, -inf }
 0x15a   : > { %v1049_v19 = vmax.f32 %v1048_v23, 0.0  ;;  %v1053_v28 = vmax.f32 %v1051_v26, %v1052_v32 }
 0x15c   : > { %1050 = vst [vmem:[%s1809_s9 + $0x6] sm:$0x1] %v1049_v19  ;;  %v1054_v16 = vrot.slane %v1053_v28, 4 }
 0x15e   : > { %v1055_v13 = vmax.f32 %v1053_v28, %v1054_v16 }
 0x160   : > { %v1056_v29 = vrot.slane %v1055_v13, 2 }
 0x162   : > { %v1057_v12 = vmax.f32 %v1055_v13, %v1056_v29 }
 0x164   : > { %v1058_v30 = vrot.slane %v1057_v12, 1 }
 0x166   : > { %v1059_v48 = vmax.f32 %v1057_v12, %v1058_v30 }
 0x168   : > { %v1060_v47 = vadd.f32 %v1059_v48, %v1799_v27 }
 0x16a   : > { %v1061_v45 = vmax.f32 %v1060_v47, 0.0 }
 0x16c   : > { %1062 = vst [vmem:[%s1809_s9 + $0x7] sm:$0x1] %v1061_v45 }
 0x16d   : > { %1389 = shalt.err (!%p1386_p3)
}
 0x16e   : > { %1322 = dma.vmem_to_hbm [thread:$0]  (%p1482_p5), %s1077_s17, 128, %s1079_s19, %s1064_s20  }
 0x16f PF: > { %p1328_p4 = scmp.ge.s32.totalorder %s1424_s15, 2  ;;  %s1090_s4 = sand.u32 1, %s1412_s12  }
 0x170   : > { %s1091_s5 = scalar_lea.sflag [#allocation4], %s1090_s4 }
 0x171   : > { %p1325_p7 = pnand %p1328_p4, %p1486_p6 }
 0x173   : > { %p1326_p8 = pneg %p1325_p7 }
 0x175   : > { %1407 = dma.done.wait (%p1326_p8), %s1091_s5, 128  }
 0x176   : > { %1409 = vsyncadd (%p1326_p8), %s1091_s5, 4294967168  ;;  %p13_p9 = scmp.ge.s32.totalorder %s1470_s18, 4   ;;  %s1903_s12 = smov %s1416_s13 }
 0x177   : > { %s1904_s13 = smov %s1420_s14  ;;  %s1905_s14 = smov %s1480_s21 }
 0x178   : > { %s1906_s15 = smov %s1470_s18  ;;  %15 = sbr.rel (!%p13_p9) target bundleno = 3 (0x3), region = 67 }
 0x17d   :  { %1097 = vsyncpa [#allocation4], 1 }
 0x17e   :  { %1099 = vsyncpa [#allocation4 + $0x1], 1 }

</bundles_post_ra>
